<compile_context>
chip_gen: v7x
topology: tpu7x:2x2x1
jax: 0.10.0
libtpu: 0.0.40
codegen_flags: <defaults>
</compile_context>

<pallas_src>
import functools

import jax
import jax.numpy as jnp
from jax.experimental import pallas as pl
from jax.experimental.pallas import tpu as pltpu


def _ddsarsa_kernel(x_ref, w1_ref, w2_ref, o_ref):
    """One batch tile: o = relu(x @ W1) @ W2 with f32 accumulation."""
    # Cast x to the MXU streaming dtype on the VPU, hidden under the DMA.
    x = x_ref[...].astype(w1_ref.dtype)                        # (TB, initus)
    h = jnp.dot(x, w1_ref[...],
                preferred_element_type=jnp.float32)            # f32 (TB, hidden)
    h = jnp.maximum(h, 0.0)                                    # ReLU in f32 (VPU)
    # Keep h in f32 for the second matmul (kernel is HBM-bound; f32 MXU
    # ingest rate is irrelevant at hidden=32) — tighter accuracy for free.
    q = jnp.dot(h, w2_ref[...],
                preferred_element_type=jnp.float32)            # f32 (TB, exitus)
    o_ref[...] = q.astype(o_ref.dtype)


def _round_up(v, m):
    return pl.cdiv(v, m) * m


@functools.partial(jax.jit, static_argnames=("block_batch", "compute_dtype"))
def deep_double_sarsa_forward(x, w1, w2, *, block_batch=8192,
                              compute_dtype=jnp.bfloat16):
    """x: (B, initus); w1: (initus, hidden); w2: (hidden, exitus) -> (B, exitus) f32.

    block_batch: batch tile size (rounded down to a multiple of 8). At the
      default 8192 the double-buffered VMEM footprint (x tile + f32 out tile,
      both lane-padded to 128) is ~12-13 MiB: under the explicit 32 MiB
      vmem_limit below on every generation (v5e scoped default is 16 MiB, so
      the limit is raised explicitly; v7x has 64 MiB physical / 32 MiB scoped
      default — stay well under ~32768 rows there).
    compute_dtype: dtype streamed to the MXU for the first matmul
      (bf16 recommended on all generations — the MXU takes bf16 at full rate
      even on v5e); accumulation, the ReLU, and the second matmul are f32.
    """
    B, initus = x.shape
    hidden = w1.shape[1]
    exitus = w2.shape[1]

    # ---- Batch tile derivation (no padding of x; ragged last block is
    # masked on writeback by Pallas). ----
    tb_cap = max(8, (block_batch // 8) * 8)
    if B <= tb_cap:
        # Single block equal to the full batch extent: always a legal block
        # shape, no divisibility requirement, grid of 1.
        TB = B
    else:
        TB = tb_cap
        # Keep >=4 grid steps (pipelining + both v7x TCs) when each step
        # would still move >=2048 rows.
        four_way = _round_up(pl.cdiv(B, 4), 8)
        if pl.cdiv(B, TB) < 4 and four_way >= 2048:
            TB = four_way
    grid = (pl.cdiv(B, TB),)

    # ---- Tiny weights: cast W1 to the streaming dtype in the wrapper
    # (16*32 elements — negligible); keep W2 in f32 for the second matmul. ----
    w1k = w1.astype(compute_dtype)
    w2k = w2.astype(jnp.float32)

    out = pl.pallas_call(
        _ddsarsa_kernel,
        out_shape=jax.ShapeDtypeStruct((B, exitus), jnp.float32),
        grid_spec=pltpu.PrefetchScalarGridSpec(
            num_scalar_prefetch=0,
            grid=grid,
            in_specs=[
                # Batch tile streams over the grid (double-buffered); x is
                # read in its stored dtype and cast inside the kernel.
                pl.BlockSpec((TB, initus), lambda i: (i, 0)),
                # Weights: constant block index -> fetched once, stay
                # resident in VMEM across the grid.
                pl.BlockSpec((initus, hidden), lambda i: (0, 0)),
                pl.BlockSpec((hidden, exitus), lambda i: (0, 0)),
            ],
            # Narrow (exitus-wide) output block: full-row contiguous HBM
            # writeback per tile, no lane padding.
            out_specs=pl.BlockSpec((TB, exitus), lambda i: (i, 0)),
        ),
        compiler_params=pltpu.CompilerParams(
            # Independent batch tiles -> parallel (2x on v7x's 2 TCs).
            dimension_semantics=("parallel",),
            # Safe on all generations; lifts v5e's 16 MiB scoped default.
            vmem_limit_bytes=32 * 1024 * 1024,
        ),
    )(x, w1k, w2k)

    return out


def init_params(key, initus, hidden, exitus):
    """Mimic PyTorch Linear default init: U(-1/sqrt(fan_in), 1/sqrt(fan_in))."""
    k1, k2 = jax.random.split(key)
    b1 = 1.0 / jnp.sqrt(jnp.float32(initus))
    b2 = 1.0 / jnp.sqrt(jnp.float32(hidden))
    # Stored as (in_features, out_features) = PyTorch weight transposed.
    w1 = jax.random.uniform(k1, (initus, hidden), jnp.float32, -b1, b1)
    w2 = jax.random.uniform(k2, (hidden, exitus), jnp.float32, -b2, b2)
    return w1, w2


def reference_forward(x, w1, w2):
    return jnp.maximum(x @ w1, 0.0) @ w2


# TODO(synk): the module's update() (RMSprop training step) is host-side
# training logic and is not implemented as a Pallas kernel.

if __name__ == "__main__":
    key = jax.random.PRNGKey(0)
    kx1, kx2, kp = jax.random.split(key, 3)

    initus, hidden, exitus = 16, 32, 4
    w1, w2 = init_params(kp, initus, hidden, exitus)

    # Case 1: tiny batch, f32 compute path, single full-extent block.
    x_small = jax.random.normal(kx1, (8, initus), jnp.float32)
    out_small = deep_double_sarsa_forward(
        x_small, w1, w2, compute_dtype=jnp.float32)
    out_small = jax.block_until_ready(out_small)
    ref_small = reference_forward(x_small, w1, w2)
    assert out_small.shape == (8, exitus)
    assert jnp.allclose(out_small, ref_small, atol=1e-5, rtol=1e-5)

    # Case 2: batch that exercises tiling + a ragged (masked) last block,
    # bf16 streaming path with in-kernel cast.
    x_big = jax.random.normal(kx2, (300, initus), jnp.float32)
    out_big = deep_double_sarsa_forward(
        x_big, w1, w2, block_batch=128, compute_dtype=jnp.bfloat16)
    out_big = jax.block_until_ready(out_big)
    ref_big = reference_forward(x_big, w1, w2)
    assert out_big.shape == (300, exitus)
    # bf16 first-layer inputs / f32 accumulation vs pure-f32 reference.
    assert jnp.allclose(out_big, ref_big, atol=5e-2, rtol=5e-2)

    # Case 3: default tile (single full-extent, non-multiple-of-8 batch), f32.
    out_big32 = deep_double_sarsa_forward(
        x_big, w1, w2, compute_dtype=jnp.float32)
    out_big32 = jax.block_until_ready(out_big32)
    assert out_big32.shape == (300, exitus)
    assert jnp.allclose(out_big32, ref_big, atol=1e-5, rtol=1e-5)

    print("KERNEL_OK")
</pallas_src>

<mosaic_0001>
module attributes {stable_mosaic.version = 11 : i64} {
  func.func @_ddsarsa_kernel(%arg0: i32, %arg1: memref<8x16xf32, #tpu.memory_space<vmem>>, %arg2: memref<16x32xf32, #tpu.memory_space<vmem>>, %arg3: memref<32x4xf32, #tpu.memory_space<vmem>>, %arg4: memref<8x4xf32, #tpu.memory_space<vmem>>) attributes {dimension_semantics = [#tpu.dimension_semantics<parallel>], iteration_bounds = array<i64: 1>, scalar_prefetch = 0 : i64, scratch_operands = 0 : i64, tpu.core_type = #tpu.core_type<tc>, window_params = [{transform_indices = @transform_0, window_bounds = array<i64: 8, 16>}, {pipeline_mode = #tpu.pipeline_mode<synchronous>, transform_indices = @transform_1, window_bounds = array<i64: 16, 32>}, {pipeline_mode = #tpu.pipeline_mode<synchronous>, transform_indices = @transform_2, window_bounds = array<i64: 32, 4>}, {transform_indices = @transform_3, window_bounds = array<i64: 8, 4>}]} {
    %c0 = arith.constant 0 : index
    %c0_0 = arith.constant 0 : index
    %0 = vector.load %arg1[%c0, %c0_0] : memref<8x16xf32, #tpu.memory_space<vmem>>, vector<8x16xf32>
    %c0_1 = arith.constant 0 : index
    %c0_2 = arith.constant 0 : index
    %1 = vector.load %arg2[%c0_1, %c0_2] : memref<16x32xf32, #tpu.memory_space<vmem>>, vector<16x32xf32>
    %cst = arith.constant dense<0.000000e+00> : vector<8x32xf32>
    %2 = tpu.matmul %0, %1, %cst {dimension_numbers = #tpu.dot_dimension_numbers<[1], [0], [0], [1], [0, 0, 1, 1], [], []>} : vector<8x16xf32>, vector<16x32xf32>, vector<8x32xf32> -> vector<8x32xf32>
    %cst_3 = arith.constant 0.000000e+00 : f32
    %3 = vector.broadcast %cst_3 : f32 to vector<8x32xf32>
    %4 = arith.maximumf %2, %3 : vector<8x32xf32>
    %c0_4 = arith.constant 0 : index
    %c0_5 = arith.constant 0 : index
    %5 = vector.load %arg3[%c0_4, %c0_5] : memref<32x4xf32, #tpu.memory_space<vmem>>, vector<32x4xf32>
    %cst_6 = arith.constant dense<0.000000e+00> : vector<8x4xf32>
    %6 = tpu.matmul %4, %5, %cst_6 {dimension_numbers = #tpu.dot_dimension_numbers<[1], [0], [0], [1], [0, 0, 1, 1], [], []>} : vector<8x32xf32>, vector<32x4xf32>, vector<8x4xf32> -> vector<8x4xf32>
    %c0_7 = arith.constant 0 : index
    %c0_8 = arith.constant 0 : index
    %7 = vector.load %arg4[%c0_7, %c0_8] : memref<8x4xf32, #tpu.memory_space<vmem>>, vector<8x4xf32>
    tpu.vector_store %arg4[%c0_7, %c0_8], %6 {strides = array<i32>} : memref<8x4xf32, #tpu.memory_space<vmem>>, vector<8x4xf32>,
    return
  }
  func.func @transform_0(%arg0: i32) -> (i32, i32) {
    %c0_i32 = arith.constant 0 : i32
    %c0_i32_0 = arith.constant 0 : i32
    return %arg0, %c0_i32 : i32, i32
  }
  func.func @transform_1(%arg0: i32) -> (i32, i32) {
    %c0_i32 = arith.constant 0 : i32
    %c0_i32_0 = arith.constant 0 : i32
    %c0_i32_1 = arith.constant 0 : i32
    return %c0_i32, %c0_i32_0 : i32, i32
  }
  func.func @transform_2(%arg0: i32) -> (i32, i32) {
    %c0_i32 = arith.constant 0 : i32
    %c0_i32_0 = arith.constant 0 : i32
    %c0_i32_1 = arith.constant 0 : i32
    return %c0_i32, %c0_i32_0 : i32, i32
  }
  func.func @transform_3(%arg0: i32) -> (i32, i32) {
    %c0_i32 = arith.constant 0 : i32
    %c0_i32_0 = arith.constant 0 : i32
    return %arg0, %c0_i32 : i32, i32
  }
}

</mosaic_0001>

<bundles_post_ra>
// kernel: deep_double_sarsa_forward.1
= control target key start
LH: loop header
LB: loop body
LE: loop exit
PB: predicated region body
PF: predicated region fallthrough
CT: control target
= control target key end

     0   :  { %v216_v0 = vmov 0.0|0.0   ;;  %vm217_vm0 = vmmov 0   ;;  %v218_v3 = vmov 0.0   ;;  %vm17_vm1 = vcmask 130048   ;;  %s263_s1 = inlined_call_operand.vmem [shape: f32[16,32], index: 1, kind: input, shape index: {}]   ;;  %s264_s2 = inlined_call_operand.vmem [shape: f32[32,4], index: 2, kind: input, shape index: {}]   ;;  %s265_s0 = inlined_call_operand.vmem [shape: f32[8,16], index: 0, kind: input, shape index: {}]   ;;  %s266_s3 = inlined_call_operand.vmem [shape: f32[8,4], index: 3, kind: output, shape index: {}]  }
   0x1   :  { %204 = vmatprep.subr.bf16.mxu0 %v216_v0  ;;  %v15_v1 = vld [vmem:[%s263_s1] sm:$0xff]  ;;  %v16_v2 = vld [vmem:[%s263_s1 + $0x8] sm:$0xff]  ;;  %190 = vmatprep.mubr.msk.f32.mxu0 %vm217_vm0, %v218_v3  ;;  %v94_v9 = vld [vmem:[%s264_s2 + $0x10] sm:$0xff]  ;;  %vm96_vm2 = vcmask 261120   ;;  %vm170_vm3 = vcmask 31744  }
   0x2   :  { %v205_v4 = vpack.c.bf16 %v16_v2, %v15_v1  ;;  %207 = vmatprep.subr.bf16.mxu1 %v216_v0  ;;  %v92_v5 = vld [vmem:[%s264_s2] sm:$0xff]  ;;  %v93_v6 = vld [vmem:[%s264_s2 + $0x8] sm:$0xff]  ;;  %201 = vmatprep.mubr.msk.f32.mxu1 %vm217_vm0, %v218_v3  ;;  %v95_v10 = vld [vmem:[%s264_s2 + $0x18] sm:$0xff] }
   0x3   :  { %v208_v7 = vpack.c.bf16 %v93_v6, %v92_v5  ;;  %v14_v8 = vld [vmem:[%s265_s0] sm:$0xff]  ;;  %v211_v11 = vpack.c.bf16 %v95_v10, %v94_v9 }
   0x4   :  { %206 = vmatpush3.bf16.msra.mxu0 %v205_v4 }
   0x5   :  { %209 = vmatpush3.bf16.msra.mxu1 %v208_v7 }
   0x6   :  { %210 = vmatprep.subr.bf16.mxu1 %v216_v0 }
   0x7   :  { %191 = vmatmul.mubr.msk.f32.vlgmr.msra.gmra.mrb[0].mxu0 %vm17_vm1, %v14_v8 }
   0x9   :  { %212 = vmatpush3.bf16.msra.mxu1 %v211_v11 }
  0xda   :  { %v87_v12 = vpop.f32.mrb[0].mxu0 }
  0xdb   :  { %v91_v13 = vmax.f32 %v87_v12, 0.0  ;;  %v192_v14 = vpop.f32.mrb[1].mxu0 }
  0xdd   :  { %202 = vmatmul.mubr.msk.f32.vlgmr.msra.gmra.mrb[0].mxu1 %vm96_vm2, %v91_v13 }
 0x1b0   :  { %v166_v15 = vpop.f32.mrb[0].mxu1 }
 0x1b1   :  { %171 = vst.msk [vmem:[%s266_s3] sm:$0xff] %vm170_vm3, %v166_v15  ;;  %v203_v16 = vpop.f32.mrb[1].mxu1 }

</bundles_post_ra>
